<compile_context>
chip_gen: v6e
topology: v6e:2x2x1
jax: 0.10.0
libtpu: 0.0.40
codegen_flags: <defaults>
</compile_context>

<pallas_src>
import functools

import jax
import jax.numpy as jnp
from jax import lax
from jax.experimental import pallas as pl
from jax.experimental.pallas import tpu as pltpu

REVIN_EPS = 1e-5
MXU_DTYPE = jnp.bfloat16      # MXU operand dtype (f32 accumulation kept)


# --------------------------------------------------------------------------
# Fused kernel: RevIN norm -> spatial_decoder MLP -> RevIN denorm.
# All data arrives as 2-D (rows, feat) slabs; the only per-batch work is the
# (tiny) statistics reduction. One jnp.dot per layer on the whole slab.
# --------------------------------------------------------------------------
def fused_kernel(x_ref, z_ref, rp_ref, bp_ref, *refs, num_layers, bb, t, eps):
    w_refs = refs[:num_layers]          # per-layer (K_l, N_l) weights (bf16)
    out_ref = refs[num_layers]          # (2, rows, C): [x_norm ; x_rec]

    C = x_ref.shape[1]
    inv_T = 1.0 / t

    # RevIN affine params — loaded/broadcast once (hoisted).
    rw = rp_ref[0:1, :]                               # (1, C)
    rb = rp_ref[1:2, :]                               # (1, C)
    inv_rw = 1.0 / (rw + eps * eps)                   # exact reciprocal

    # ---- Per-(batch, channel) statistics over time (two-pass, f32) ----
    mean_parts, istd_parts, std_parts = [], [], []
    for b in range(bb):                               # static & tiny: reductions only
        xb = x_ref[b * t:(b + 1) * t, :]              # (T, C)
        mean_b = jnp.sum(xb, axis=0, keepdims=True) * inv_T
        xc = xb - mean_b
        var_b = jnp.sum(xc * xc, axis=0, keepdims=True) * inv_T   # biased var
        istd_b = lax.rsqrt(var_b + eps)               # EUP
        std_b = (var_b + eps) * istd_b                # sqrt(v) = v * rsqrt(v)
        mean_parts.append(jnp.broadcast_to(mean_b, (t, C)))
        istd_parts.append(jnp.broadcast_to(istd_b, (t, C)))
        std_parts.append(jnp.broadcast_to(std_b, (t, C)))

    def cat(parts):
        return parts[0] if bb == 1 else jnp.concatenate(parts, axis=0)

    mean_f = cat(mean_parts)                          # (rows, C)
    istd_f = cat(istd_parts)
    std_f = cat(std_parts)

    # ---- RevIN norm on the whole slab ----
    x = x_ref[...]                                    # (rows, C) f32
    xn = ((x - mean_f) * istd_f) * rw + rb

    # ---- spatial_decoder MLP (dropout = identity, eval) ----
    h = z_ref[...]                                    # (rows, L) bf16
    for l in range(num_layers):
        w = w_refs[l][...]                            # (K_l, N_l) bf16
        n_l = w.shape[1]
        h = jnp.dot(h.astype(w.dtype), w, preferred_element_type=jnp.float32)
        h = h + bp_ref[l:l + 1, :n_l]                 # (1, N_l) f32 bias
        if l < num_layers - 1:
            h = jnp.maximum(h, 0.0)                   # ReLU

    # ---- RevIN denorm ----
    xr = ((h - rb) * inv_rw) * std_f + mean_f

    out_ref[0] = xn.astype(out_ref.dtype)
    out_ref[1] = xr.astype(out_ref.dtype)


def base_model_forward_impl(x, z, revin_w, revin_b, mlp_w, mlp_b):
    B, T, C = x.shape
    L = z.shape[-1]
    num_layers = len(mlp_w)

    # Shard batch tiles across v7x's two TensorCores only when there is enough
    # work per tile; single grid step at the demo shapes.
    BB = B
    if B % 2 == 0 and B * T >= 2048 and ((B // 2) * T) % 8 == 0:
        BB = B // 2
    n_tiles = B // BB
    rows = BB * T

    # Wrapper-side layout plumbing (no in-kernel reshapes).
    x2 = x.reshape(B * T, C)
    z2 = z.reshape(B * T, L).astype(MXU_DTYPE)
    rp = jnp.stack([revin_w, revin_b], axis=0)                    # (2, C)
    w_bf = [w.astype(MXU_DTYPE) for w in mlp_w]
    n_max = max(int(w.shape[1]) for w in mlp_w)
    bp = jnp.zeros((num_layers, n_max), jnp.float32)
    for l, b in enumerate(mlp_b):
        bp = bp.at[l, :b.shape[0]].set(b)                         # packed biases

    kernel = functools.partial(fused_kernel, num_layers=num_layers,
                               bb=BB, t=T, eps=REVIN_EPS)

    in_specs = [
        pl.BlockSpec((rows, C), lambda i: (i, 0)),                # x slab
        pl.BlockSpec((rows, L), lambda i: (i, 0)),                # z slab
        pl.BlockSpec((2, C), lambda i: (0, 0)),                   # packed RevIN affine
        pl.BlockSpec((num_layers, n_max), lambda i: (0, 0)),      # packed biases
    ]
    for w in w_bf:                                                # VMEM-resident weights
        in_specs.append(pl.BlockSpec(w.shape, lambda i: (0, 0)))

    out_specs = pl.BlockSpec((2, rows, C), lambda i: (0, i, 0))   # [x_norm ; x_rec]

    flops = 2 * B * T * sum(int(w.shape[0]) * int(w.shape[1]) for w in mlp_w)
    bytes_accessed = int(x2.size * 4 + z2.size * 2 + rp.size * 4 + bp.size * 4
                         + sum(int(w.size) * 2 for w in w_bf)
                         + 2 * B * T * C * 4)

    out = pl.pallas_call(
        kernel,
        out_shape=jax.ShapeDtypeStruct((2, B * T, C), x.dtype),
        grid=(n_tiles,),
        in_specs=in_specs,
        out_specs=out_specs,
        compiler_params=pltpu.CompilerParams(
            dimension_semantics=("parallel",),
            vmem_limit_bytes=32 * 1024 * 1024),
        cost_estimate=pl.CostEstimate(
            flops=flops,
            transcendentals=int(B * C + C),
            bytes_accessed=bytes_accessed),
    )(x2, z2, rp, bp, *w_bf)

    x_norm = out[0].reshape(B, T, C)
    x_rec = out[1].reshape(B, T, C)
    return x_norm, x_rec


@jax.jit
def base_model_forward(x, z, revin_w, revin_b, mlp_w, mlp_b):
    # x: (B, T, input_size)   z: (B, T, local_size + context_size)
    return base_model_forward_impl(x, z, revin_w, revin_b, mlp_w, mlp_b)


# --------------------------------------------------------------------------
# Deterministic parameter construction.
# --------------------------------------------------------------------------
def init_params(key, input_size, local_size, context_size,
                spatial_hidden_size, num_layers):
    dims = ([local_size + context_size]
            + [spatial_hidden_size] * (num_layers - 1)
            + [input_size])
    keys = jax.random.split(key, 2 * num_layers)
    weights, biases = [], []
    for i in range(num_layers):
        fan_in = dims[i]
        w = jax.random.normal(keys[2 * i], (dims[i], dims[i + 1]),
                              jnp.float32) / jnp.sqrt(jnp.float32(fan_in))
        b = jax.random.normal(keys[2 * i + 1], (dims[i + 1],),
                              jnp.float32) * 0.01
        weights.append(w)
        biases.append(b)
    revin_w = jnp.ones((input_size,), jnp.float32)
    revin_b = jnp.zeros((input_size,), jnp.float32)
    return dict(mlp_w=weights, mlp_b=biases, revin_w=revin_w, revin_b=revin_b)


if __name__ == "__main__":
    # Small shapes consistent with the module's constructor arguments.
    input_size = 6            # C
    local_size = 5
    context_size = 3          # latent L = 8
    window_size = 8           # T
    num_layers = 2
    spatial_hidden_size = 32
    batch = 2                 # B

    key = jax.random.PRNGKey(0)
    k_x, k_z, k_p = jax.random.split(key, 3)
    x = jax.random.normal(k_x, (batch, window_size, input_size), jnp.float32)
    z = jax.random.normal(k_z, (batch, window_size, local_size + context_size),
                          jnp.float32)
    params = init_params(k_p, input_size, local_size, context_size,
                         spatial_hidden_size, num_layers)

    x_norm, x_rec = base_model_forward(
        x, z, params["revin_w"], params["revin_b"],
        params["mlp_w"], params["mlp_b"])
    jax.block_until_ready((x_norm, x_rec))

    assert x_norm.shape == (batch, window_size, input_size)
    assert x_rec.shape == (batch, window_size, input_size)
    assert bool(jnp.all(jnp.isfinite(x_norm))) and bool(jnp.all(jnp.isfinite(x_rec)))
    print("KERNEL_OK")
</pallas_src>

<mosaic_0001>
module attributes {stable_mosaic.version = 11 : i64} {
  func.func @fused_kernel(%arg0: i32, %arg1: memref<16x6xf32, #tpu.memory_space<vmem>>, %arg2: memref<16x8xbf16, #tpu.memory_space<vmem>>, %arg3: memref<2x6xf32, #tpu.memory_space<vmem>>, %arg4: memref<2x32xf32, #tpu.memory_space<vmem>>, %arg5: memref<8x32xbf16, #tpu.memory_space<vmem>>, %arg6: memref<32x6xbf16, #tpu.memory_space<vmem>>, %arg7: memref<2x16x6xf32, #tpu.memory_space<vmem>>) attributes {dimension_semantics = [#tpu.dimension_semantics<parallel>], iteration_bounds = array<i64: 1>, scalar_prefetch = 0 : i64, scratch_operands = 0 : i64, tpu.core_type = #tpu.core_type<tc>, window_params = [{transform_indices = @transform_0, window_bounds = array<i64: 16, 6>}, {transform_indices = @transform_1, window_bounds = array<i64: 16, 8>}, {pipeline_mode = #tpu.pipeline_mode<synchronous>, transform_indices = @transform_2, window_bounds = array<i64: 2, 6>}, {pipeline_mode = #tpu.pipeline_mode<synchronous>, transform_indices = @transform_3, window_bounds = array<i64: 2, 32>}, {pipeline_mode = #tpu.pipeline_mode<synchronous>, transform_indices = @transform_4, window_bounds = array<i64: 8, 32>}, {pipeline_mode = #tpu.pipeline_mode<synchronous>, transform_indices = @transform_5, window_bounds = array<i64: 32, 6>}, {transform_indices = @transform_6, window_bounds = array<i64: 2, 16, 6>}]} {
    %c0 = arith.constant 0 : index
    %c0_0 = arith.constant 0 : index
    %0 = vector.load %arg3[%c0, %c0_0] : memref<2x6xf32, #tpu.memory_space<vmem>>, vector<1x6xf32>
    %c1 = arith.constant 1 : index
    %c0_1 = arith.constant 0 : index
    %1 = vector.load %arg3[%c1, %c0_1] : memref<2x6xf32, #tpu.memory_space<vmem>>, vector<1x6xf32>
    %cst = arith.constant 1.000000e-10 : f32
    %2 = vector.broadcast %cst : f32 to vector<1x6xf32>
    %3 = arith.addf %0, %2 : vector<1x6xf32>
    %cst_2 = arith.constant 1.000000e+00 : f32
    %4 = vector.broadcast %cst_2 : f32 to vector<1x6xf32>
    %5 = arith.divf %4, %3 : vector<1x6xf32>
    %c0_3 = arith.constant 0 : index
    %c0_4 = arith.constant 0 : index
    %6 = vector.load %arg1[%c0_3, %c0_4] : memref<16x6xf32, #tpu.memory_space<vmem>>, vector<8x6xf32>
    %cst_5 = arith.constant dense<0.000000e+00> : vector<6xf32>
    %7 = vector.multi_reduction <add>, %6, %cst_5 [0] : vector<8x6xf32> to vector<6xf32>
    %8 = vector.shape_cast %7 : vector<6xf32> to vector<1x6xf32>
    %cst_6 = arith.constant 1.250000e-01 : f32
    %9 = vector.broadcast %cst_6 : f32 to vector<1x6xf32>
    %10 = arith.mulf %8, %9 : vector<1x6xf32>
    %11 = vector.broadcast %10 : vector<1x6xf32> to vector<8x6xf32>
    %12 = arith.subf %6, %11 : vector<8x6xf32>
    %13 = arith.mulf %12, %12 : vector<8x6xf32>
    %cst_7 = arith.constant dense<0.000000e+00> : vector<6xf32>
    %14 = vector.multi_reduction <add>, %13, %cst_7 [0] : vector<8x6xf32> to vector<6xf32>
    %15 = vector.shape_cast %14 : vector<6xf32> to vector<1x6xf32>
    %cst_8 = arith.constant 1.250000e-01 : f32
    %16 = vector.broadcast %cst_8 : f32 to vector<1x6xf32>
    %17 = arith.mulf %15, %16 : vector<1x6xf32>
    %cst_9 = arith.constant 9.99999974E-6 : f32
    %18 = vector.broadcast %cst_9 : f32 to vector<1x6xf32>
    %19 = arith.addf %17, %18 : vector<1x6xf32>
    %20 = math.rsqrt %19 : vector<1x6xf32>
    %cst_10 = arith.constant 9.99999974E-6 : f32
    %21 = vector.broadcast %cst_10 : f32 to vector<1x6xf32>
    %22 = arith.addf %17, %21 : vector<1x6xf32>
    %23 = arith.mulf %22, %20 : vector<1x6xf32>
    %24 = vector.shape_cast %10 : vector<1x6xf32> to vector<1x6xf32>
    %25 = vector.broadcast %24 : vector<1x6xf32> to vector<8x6xf32>
    %26 = vector.shape_cast %20 : vector<1x6xf32> to vector<1x6xf32>
    %27 = vector.broadcast %26 : vector<1x6xf32> to vector<8x6xf32>
    %28 = vector.shape_cast %23 : vector<1x6xf32> to vector<1x6xf32>
    %29 = vector.broadcast %28 : vector<1x6xf32> to vector<8x6xf32>
    %c8 = arith.constant 8 : index
    %c0_11 = arith.constant 0 : index
    %30 = vector.load %arg1[%c8, %c0_11] : memref<16x6xf32, #tpu.memory_space<vmem>>, vector<8x6xf32>
    %cst_12 = arith.constant dense<0.000000e+00> : vector<6xf32>
    %31 = vector.multi_reduction <add>, %30, %cst_12 [0] : vector<8x6xf32> to vector<6xf32>
    %32 = vector.shape_cast %31 : vector<6xf32> to vector<1x6xf32>
    %cst_13 = arith.constant 1.250000e-01 : f32
    %33 = vector.broadcast %cst_13 : f32 to vector<1x6xf32>
    %34 = arith.mulf %32, %33 : vector<1x6xf32>
    %35 = vector.broadcast %34 : vector<1x6xf32> to vector<8x6xf32>
    %36 = arith.subf %30, %35 : vector<8x6xf32>
    %37 = arith.mulf %36, %36 : vector<8x6xf32>
    %cst_14 = arith.constant dense<0.000000e+00> : vector<6xf32>
    %38 = vector.multi_reduction <add>, %37, %cst_14 [0] : vector<8x6xf32> to vector<6xf32>
    %39 = vector.shape_cast %38 : vector<6xf32> to vector<1x6xf32>
    %cst_15 = arith.constant 1.250000e-01 : f32
    %40 = vector.broadcast %cst_15 : f32 to vector<1x6xf32>
    %41 = arith.mulf %39, %40 : vector<1x6xf32>
    %cst_16 = arith.constant 9.99999974E-6 : f32
    %42 = vector.broadcast %cst_16 : f32 to vector<1x6xf32>
    %43 = arith.addf %41, %42 : vector<1x6xf32>
    %44 = math.rsqrt %43 : vector<1x6xf32>
    %cst_17 = arith.constant 9.99999974E-6 : f32
    %45 = vector.broadcast %cst_17 : f32 to vector<1x6xf32>
    %46 = arith.addf %41, %45 : vector<1x6xf32>
    %47 = arith.mulf %46, %44 : vector<1x6xf32>
    %48 = vector.shape_cast %34 : vector<1x6xf32> to vector<1x6xf32>
    %49 = vector.broadcast %48 : vector<1x6xf32> to vector<8x6xf32>
    %50 = vector.shape_cast %44 : vector<1x6xf32> to vector<1x6xf32>
    %51 = vector.broadcast %50 : vector<1x6xf32> to vector<8x6xf32>
    %52 = vector.shape_cast %47 : vector<1x6xf32> to vector<1x6xf32>
    %53 = vector.broadcast %52 : vector<1x6xf32> to vector<8x6xf32>
    %54 = tpu.concatenate %25, %49 in 0 : vector<8x6xf32>, vector<8x6xf32> -> vector<16x6xf32>
    %55 = tpu.concatenate %27, %51 in 0 : vector<8x6xf32>, vector<8x6xf32> -> vector<16x6xf32>
    %56 = tpu.concatenate %29, %53 in 0 : vector<8x6xf32>, vector<8x6xf32> -> vector<16x6xf32>
    %c0_18 = arith.constant 0 : index
    %c0_19 = arith.constant 0 : index
    %57 = vector.load %arg1[%c0_18, %c0_19] : memref<16x6xf32, #tpu.memory_space<vmem>>, vector<16x6xf32>
    %58 = arith.subf %57, %54 : vector<16x6xf32>
    %59 = arith.mulf %58, %55 : vector<16x6xf32>
    %60 = vector.broadcast %0 : vector<1x6xf32> to vector<16x6xf32>
    %61 = arith.mulf %59, %60 : vector<16x6xf32>
    %62 = vector.broadcast %1 : vector<1x6xf32> to vector<16x6xf32>
    %63 = arith.addf %61, %62 : vector<16x6xf32>
    %c0_20 = arith.constant 0 : index
    %c0_21 = arith.constant 0 : index
    %64 = vector.load %arg2[%c0_20, %c0_21] : memref<16x8xbf16, #tpu.memory_space<vmem>>, vector<16x8xbf16>
    %c0_22 = arith.constant 0 : index
    %c0_23 = arith.constant 0 : index
    %65 = vector.load %arg5[%c0_22, %c0_23] : memref<8x32xbf16, #tpu.memory_space<vmem>>, vector<8x32xbf16>
    %cst_24 = arith.constant dense<0.000000e+00> : vector<16x32xf32>
    %66 = tpu.matmul %64, %65, %cst_24 {dimension_numbers = #tpu.dot_dimension_numbers<[1], [0], [0], [1], [0, 0, 1, 1], [], []>} : vector<16x8xbf16>, vector<8x32xbf16>, vector<16x32xf32> -> vector<16x32xf32>
    %c0_25 = arith.constant 0 : index
    %c0_26 = arith.constant 0 : index
    %67 = vector.load %arg4[%c0_25, %c0_26] : memref<2x32xf32, #tpu.memory_space<vmem>>, vector<1x32xf32>
    %68 = vector.broadcast %67 : vector<1x32xf32> to vector<16x32xf32>
    %69 = arith.addf %66, %68 : vector<16x32xf32>
    %cst_27 = arith.constant 0.000000e+00 : f32
    %70 = vector.broadcast %cst_27 : f32 to vector<16x32xf32>
    %71 = arith.maximumf %69, %70 : vector<16x32xf32>
    %c0_28 = arith.constant 0 : index
    %c0_29 = arith.constant 0 : index
    %72 = vector.load %arg6[%c0_28, %c0_29] : memref<32x6xbf16, #tpu.memory_space<vmem>>, vector<32x6xbf16>
    %73 = arith.truncf %71 : vector<16x32xf32> to vector<16x32xbf16>
    %cst_30 = arith.constant dense<0.000000e+00> : vector<16x6xf32>
    %74 = tpu.matmul %73, %72, %cst_30 {dimension_numbers = #tpu.dot_dimension_numbers<[1], [0], [0], [1], [0, 0, 1, 1], [], []>} : vector<16x32xbf16>, vector<32x6xbf16>, vector<16x6xf32> -> vector<16x6xf32>
    %c1_31 = arith.constant 1 : index
    %c0_32 = arith.constant 0 : index
    %75 = vector.load %arg4[%c1_31, %c0_32] : memref<2x32xf32, #tpu.memory_space<vmem>>, vector<1x6xf32>
    %76 = vector.broadcast %75 : vector<1x6xf32> to vector<16x6xf32>
    %77 = arith.addf %74, %76 : vector<16x6xf32>
    %78 = vector.broadcast %1 : vector<1x6xf32> to vector<16x6xf32>
    %79 = arith.subf %77, %78 : vector<16x6xf32>
    %80 = vector.broadcast %5 : vector<1x6xf32> to vector<16x6xf32>
    %81 = arith.mulf %79, %80 : vector<16x6xf32>
    %82 = arith.mulf %81, %56 : vector<16x6xf32>
    %83 = arith.addf %82, %54 : vector<16x6xf32>
    %c0_33 = arith.constant 0 : index
    %c0_34 = arith.constant 0 : index
    %c0_35 = arith.constant 0 : index
    %84 = vector.load %arg7[%c0_33, %c0_34, %c0_35] : memref<2x16x6xf32, #tpu.memory_space<vmem>>, vector<1x16x6xf32>
    %85 = vector.shape_cast %84 : vector<1x16x6xf32> to vector<16x6xf32>
    %86 = vector.shape_cast %63 : vector<16x6xf32> to vector<1x16x6xf32>
    tpu.vector_store %arg7[%c0_33, %c0_34, %c0_35], %86 {strides = array<i32>} : memref<2x16x6xf32, #tpu.memory_space<vmem>>, vector<1x16x6xf32>,
    %c1_36 = arith.constant 1 : index
    %c0_37 = arith.constant 0 : index
    %c0_38 = arith.constant 0 : index
    %87 = vector.load %arg7[%c1_36, %c0_37, %c0_38] : memref<2x16x6xf32, #tpu.memory_space<vmem>>, vector<1x16x6xf32>
    %88 = vector.shape_cast %87 : vector<1x16x6xf32> to vector<16x6xf32>
    %89 = vector.shape_cast %83 : vector<16x6xf32> to vector<1x16x6xf32>
    tpu.vector_store %arg7[%c1_36, %c0_37, %c0_38], %89 {strides = array<i32>} : memref<2x16x6xf32, #tpu.memory_space<vmem>>, vector<1x16x6xf32>,
    return
  }
  func.func @transform_0(%arg0: i32) -> (i32, i32) {
    %c0_i32 = arith.constant 0 : i32
    %c0_i32_0 = arith.constant 0 : i32
    return %arg0, %c0_i32 : i32, i32
  }
  func.func @transform_1(%arg0: i32) -> (i32, i32) {
    %c0_i32 = arith.constant 0 : i32
    %c0_i32_0 = arith.constant 0 : i32
    return %arg0, %c0_i32 : i32, i32
  }
  func.func @transform_2(%arg0: i32) -> (i32, i32) {
    %c0_i32 = arith.constant 0 : i32
    %c0_i32_0 = arith.constant 0 : i32
    %c0_i32_1 = arith.constant 0 : i32
    return %c0_i32, %c0_i32_0 : i32, i32
  }
  func.func @transform_3(%arg0: i32) -> (i32, i32) {
    %c0_i32 = arith.constant 0 : i32
    %c0_i32_0 = arith.constant 0 : i32
    %c0_i32_1 = arith.constant 0 : i32
    return %c0_i32, %c0_i32_0 : i32, i32
  }
  func.func @transform_4(%arg0: i32) -> (i32, i32) {
    %c0_i32 = arith.constant 0 : i32
    %c0_i32_0 = arith.constant 0 : i32
    %c0_i32_1 = arith.constant 0 : i32
    return %c0_i32, %c0_i32_0 : i32, i32
  }
  func.func @transform_5(%arg0: i32) -> (i32, i32) {
    %c0_i32 = arith.constant 0 : i32
    %c0_i32_0 = arith.constant 0 : i32
    %c0_i32_1 = arith.constant 0 : i32
    return %c0_i32, %c0_i32_0 : i32, i32
  }
  func.func @transform_6(%arg0: i32) -> (i32, i32, i32) {
    %c0_i32 = arith.constant 0 : i32
    %c0_i32_0 = arith.constant 0 : i32
    %c0_i32_1 = arith.constant 0 : i32
    return %c0_i32, %arg0, %c0_i32_0 : i32, i32, i32
  }
}

</mosaic_0001>

<bundles_post_ra>
// kernel: base_model_forward.1
= control target key start
LH: loop header
LB: loop body
LE: loop exit
PB: predicated region body
PF: predicated region fallthrough
CT: control target
= control target key end

     0   :  { %vm105_vm0 = vcmask 1043456   ;;  %v280_v0 = vmov 0.0   ;;  %vm281_vm1 = vmmov 0   ;;  %vm101_vm2 = vcmask 64512   ;;  %s375_s4 = inlined_call_operand.vmem [shape: bf16[8,32], index: 4, kind: input, shape index: {}]   ;;  %s376_s1 = inlined_call_operand.vmem [shape: bf16[16,8], index: 1, kind: input, shape index: {}]   ;;  %s377_s5 = inlined_call_operand.vmem [shape: bf16[32,6], index: 5, kind: input, shape index: {}]   ;;  %s378_s0 = inlined_call_operand.vmem [shape: f32[16,6], index: 0, kind: input, shape index: {}]   ;;  %s379_s2 = inlined_call_operand.vmem [shape: f32[2,6], index: 2, kind: input, shape index: {}]   ;;  %s380_s6 = inlined_call_operand.vmem [shape: f32[2,16,6], index: 6, kind: output, shape index: {}]   ;;  %s381_s3 = inlined_call_operand.vmem [shape: f32[2,32], index: 3, kind: input, shape index: {}]  }
   0x1   :  { %255 = vmatprep.subr.bf16.mxu0 %v280_v0  ;;  %v90_v1 = vld [vmem:[%s375_s4] sm:$0xf]  ;;  %257 = vmatprep.mubr.msk.bf16.mxu0 %vm281_vm1, %v280_v0  ;;  %v272_v4 = vld [vmem:[%s377_s5 + $0x8] sm:$0xff]   ;;  %vm30_vm3 = vcmask 48128   ;;  %v76_v46 = vlaneseq  ;;  %vm174_vm4 = vcmask 261120  }
   0x2   :  { %v107_v2 = vsel %vm105_vm0, %v90_v1, 0  ;;  %v271_v3 = vld [vmem:[%s376_s1] sm:$0xff]   ;;  %261 = vmatprep.subr.bf16.mxu1 %v280_v0  ;;  %265 = vmatprep.mubr.msk.bf16.mxu1 %vm281_vm1, %v280_v0  ;;  %v52_v8 = vld [vmem:[%s378_s0 + $0x8] sm:$0xff] }
   0x3   :  { %256 = vmatpush3.bf16.msra.mxu0 %v107_v2  ;;  %262 = vmatpush3.bf16.msra.mxu1 %v272_v4  ;;  %v273_v5 = vld [vmem:[%s377_s5] sm:$0xff]   ;;  %v53_v10 = vsel %vm30_vm3, %v52_v8, 0.0  ;;  %v77_v47 = vshrl.u32 %v76_v46, 7 }
   0x4   :  { %263 = vmatprep.subr.bf16.mxu1 %v280_v0  ;;  %v29_v6 = vld [vmem:[%s378_s0] sm:$0xff]  ;;  %v54_v11 = vrot.slane %v53_v10, 4 }
   0x5   :  { %v31_v7 = vsel %vm30_vm3, %v29_v6, 0.0  ;;  %v78_v48 = vsub.s32 0, %v77_v47  ;;  %v24_v49 = vld [vmem:[%s379_s2] sm:$0x1]  ;;  %v240_v57 = vld [vmem:[%s379_s2 + $0x1] ss:$0 sm:$0xff] }
   0x6   :  { %258 = vmatmul.mubr.msk.bf16.vlgmr.msra.gmra.mxu0 %vm101_vm2, %v271_v3  ;;  %v32_v9 = vrot.slane %v31_v7, 4  ;;  %v55_v13 = vadd.f32 %v54_v11, %v53_v10  ;;  %v241_v61 = vld [vmem:[%s381_s3] ss:$0 sm:$0xff] }
   0x7   :  { %264 = vmatpush3.bf16.msra.mxu1 %v273_v5  ;;  %v79_v50 = vrot.slane %v24_v49, %v78_v48 }
   0x8   :  { %v33_v12 = vadd.f32 %v32_v9, %v31_v7  ;;  %v56_v15 = vrot.slane %v55_v13, 2  ;;  %v26_v7 = vadd.f32 1e-10, %v24_v49  ;;  %v244_v9 = vld [vmem:[%s381_s3 + $0x1] ss:$0 sm:$0xff] }
   0xa   :  { %v34_v14 = vrot.slane %v33_v12, 2  ;;  %v57_v17 = vadd.f32 %v56_v15, %v55_v13 }
   0xc   :  { %v35_v16 = vadd.f32 %v34_v14, %v33_v12  ;;  %v58_v19 = vrot.slane %v57_v17, 1 }
   0xe   :  { %v36_v18 = vrot.slane %v35_v16, 1  ;;  %v59_v21 = vadd.f32 %v58_v19, %v57_v17 }
  0x10   :  { %v37_v20 = vadd.f32 %v36_v18, %v35_v16  ;;  %v339_v23 = vmul.f32 0.125, %v59_v21 }
  0x12   :  { %v337_v22 = vmul.f32 0.125, %v37_v20  ;;  %v61_v25 = vsub.f32 %v52_v8, %v339_v23 }
  0x14   :  { %v39_v24 = vsub.f32 %v29_v6, %v337_v22  ;;  %v62_v27 = vmul.f32 %v61_v25, %v61_v25 }
  0x16   :  { %v40_v26 = vmul.f32 %v39_v24, %v39_v24  ;;  %v63_v30 = vsel %vm30_vm3, %v62_v27, 0.0 }
  0x17   :  { %v64_v31 = vrot.slane %v63_v30, 4 }
  0x18   :  { %v41_v28 = vsel %vm30_vm3, %v40_v26, 0.0 }
  0x19   :  { %v42_v29 = vrot.slane %v41_v28, 4  ;;  %v65_v33 = vadd.f32 %v64_v31, %v63_v30 }
  0x1b   :  { %v43_v32 = vadd.f32 %v42_v29, %v41_v28  ;;  %v66_v35 = vrot.slane %v65_v33, 2 }
  0x1d   :  { %v44_v34 = vrot.slane %v43_v32, 2  ;;  %v67_v37 = vadd.f32 %v66_v35, %v65_v33 }
  0x1f   :  { %v45_v36 = vadd.f32 %v44_v34, %v43_v32  ;;  %v68_v39 = vrot.slane %v67_v37, 1 }
  0x21   :  { %v46_v38 = vrot.slane %v45_v36, 1  ;;  %v69_v41 = vadd.f32 %v68_v39, %v67_v37 }
  0x23   :  { %v47_v40 = vadd.f32 %v46_v38, %v45_v36  ;;  %v70_v43 = vmul.f32 0.125, %v69_v41 }
  0x25   :  { %v48_v42 = vmul.f32 0.125, %v47_v40  ;;  %v71_v45 = vadd.f32 1e-05, %v70_v43 }
  0x27   :  { %v49_v44 = vadd.f32 1e-05, %v48_v42 }
  0x29   :  { %274 = vrsqrt.f32 %v49_v44 }
  0x2a   :  { %276 = vrsqrt.f32 %v71_v45 }
  0x2b   :  { %278 = vrcp.f32 %v26_v7 }
  0x36   :  { %v275_v51 = vpop.eup %274 }
  0x37   :  { %v277_v52 = vpop.eup %276  ;;  %v51_v53 = vmul.f32 %v275_v51, %v49_v44  ;;  %v74_v54 = vmul.f32 %v275_v51, %v39_v24 }
  0x38   :  { %v75_v55 = vmul.f32 %v277_v52, %v61_v25  ;;  %v279_v8 = vpop.eup %278  ;;  %v73_v20 = vmul.f32 %v277_v52, %v71_v45 }
  0x39   :  { %v80_v56 = vmul.f32 %v79_v50, %v74_v54  ;;  %v224_v12 = vrot.slane %v279_v8, %v78_v48 }
  0x3a   :  { %v81_v58 = vmul.f32 %v79_v50, %v75_v55 }
  0x3b   :  { %v86_v59 = vadd.f32 %v240_v57, %v80_v56 }
  0x3c   :  { %v87_v60 = vadd.f32 %v240_v57, %v81_v58 }
  0x3d   :  { %231 = vst.msk [vmem:[%s380_s6] sm:$0xff] %vm30_vm3, %v86_v59 }
  0x3e   :  { %232 = vst.msk [vmem:[%s380_s6 + $0x8] sm:$0xff] %vm30_vm3, %v87_v60 }
  0xc6   :  { %v143_v62 = vpop.f32.mrf.mxu0 }
  0xc7   :  { %v144_v0 = vadd.f32 %v241_v61, %v143_v62 }
  0xc8   :  { %v259_v63 = vpop.f32.mrf.mxu0 }
  0xc9   :  { %v150_v4 = vmax.f32 %v144_v0, 0.0 }
  0xca   :  { %v146_v1 = vpop.f32.mrf.mxu0 }
  0xcb   :  { %v147_v2 = vadd.f32 %v241_v61, %v146_v1 }
  0xcc   :  { %v260_v3 = vpop.f32.mrf.mxu0 }
  0xcd   :  { %v151_v5 = vmax.f32 %v147_v2, 0.0 }
  0xcf   :  { %v156_v6 = vpack.c.bf16 %v151_v5, %v150_v4 }
  0xd1   :  { %266 = vmatmul.mubr.msk.bf16.vlgmr.msra.gmra.mxu1 %vm174_vm4, %v156_v6 }
 0x191   :  { %v212_v10 = vpop.f32.mrf.mxu1 }
 0x192   :  { %v213_v11 = vadd.f32 %v244_v9, %v212_v10 }
 0x193   :  { %v267_v13 = vpop.f32.mrf.mxu1 }
 0x194   :  { %v219_v14 = vsub.f32 %v213_v11, %v240_v57 }
 0x195   :  { %v215_v15 = vpop.f32.mrf.mxu1 }
 0x196   :  { %v225_v16 = vmul.f32 %v224_v12, %v219_v14  ;;  %v216_v17 = vadd.f32 %v244_v9, %v215_v15 }
 0x197   :  { %v268_v18 = vpop.f32.mrf.mxu1 }
 0x198   :  { %v227_v19 = vmul.f32 %v225_v16, %v51_v53  ;;  %v220_v21 = vsub.f32 %v216_v17, %v240_v57 }
 0x19a   :  { %v229_v24 = vadd.f32 %v227_v19, %v337_v22  ;;  %v226_v25 = vmul.f32 %v224_v12, %v220_v21 }
 0x19c   :  { %248 = vst.msk [vmem:[%s380_s6 + $0x10] sm:$0xff] %vm30_vm3, %v229_v24  ;;  %v228_v26 = vmul.f32 %v226_v25, %v73_v20 }
 0x19e   :  { %v230_v27 = vadd.f32 %v228_v26, %v339_v23 }
 0x1a0   :  { %249 = vst.msk [vmem:[%s380_s6 + $0x18] sm:$0xff] %vm30_vm3, %v230_v27 }

</bundles_post_ra>
